<compile_context>
chip_gen: v5e
topology: v5e:2x2
jax: 0.10.0
libtpu: 0.0.40
codegen_flags: <defaults>
</compile_context>

<pallas_src>
import jax
import jax.numpy as jnp
import numpy as np
from jax.experimental import pallas as pl
from jax.experimental.pallas import tpu as pltpu


def adaptive_loss_kernel(x_ref, y_ref, m_ref, rp_ref, rt_ref, out_ref):
    x = x_ref[...]                        # (B, 1) cls logits
    y = y_ref[...]                        # (B, 1) cls targets {0,1}
    mask = m_ref[...]                     # (B, 1) regression mask
    rp = rp_ref[...]                      # (B, 4) reg predictions
    rt = rt_ref[...]                      # (B, 4) reg targets

    B = x.shape[0]
    inv_n = 1.0 / B                       # trace-time constant

    # ---- classification partials (BCE-with-logits), sharing exp(-|x|) ----
    t = jnp.exp(-jnp.abs(x))                                   # single EUP exp
    bce = jnp.maximum(x, 0.0) - x * y + jnp.log1p(t)           # stable BCE
    inv_1pt = 1.0 / (1.0 + t)
    sig = jnp.where(x >= 0.0, inv_1pt, t * inv_1pt)            # sigmoid(x)
    cls_g = sig - y                                            # unscaled dL/dlogit

    # ---- regression partials (masked SmoothL1, beta = 1.0) ----
    diff = (rp - rt) * mask                                    # (B,4), lane-broadcast mask
    absd = jnp.abs(diff)
    sl1 = jnp.where(absd < 1.0, 0.5 * diff * diff, absd - 0.5)
    reg_g = jnp.clip(diff, -1.0, 1.0)                          # diff already masked

    # ---- independent batch (sublane) reductions -> (1,1) each ----
    bce_sum = jnp.sum(bce, axis=0, keepdims=True)
    valid = jnp.sum(mask, axis=0, keepdims=True)
    cg2_sum = jnp.sum(cls_g * cls_g, axis=0, keepdims=True)
    sl1_sum = jnp.sum(jnp.sum(sl1, axis=1, keepdims=True), axis=0, keepdims=True)
    rg2_sum = jnp.sum(jnp.sum(reg_g * reg_g, axis=1, keepdims=True),
                      axis=0, keepdims=True)

    cls_loss = bce_sum * inv_n                                 # mean BCE

    valid_pos = valid > 0.0
    denom = B * jnp.maximum(valid, 1.0)                        # matches reference
    reg_loss = jnp.where(valid_pos, sl1_sum / denom, 0.0)

    # analytic gradient norms -> adaptive regression weight
    cls_gnorm = jnp.sqrt(cg2_sum) * inv_n
    reg_gnorm = jnp.where(valid_pos, jnp.sqrt(rg2_sum) / denom, 0.0)
    grad_ratio = cls_gnorm / (reg_gnorm + 1e-8)
    reg_weight = jnp.where((reg_gnorm > 0.0) & (cls_gnorm > 0.0),
                           jnp.clip(grad_ratio, 0.1, 10.0), 1.0)
    total = cls_loss + reg_weight * reg_loss                   # cls_weight = 1.0

    # ---- single lane-dense (1,128) store: lanes [total, cls, reg, 0...] ----
    lane = jax.lax.broadcasted_iota(jnp.int32, out_ref.shape, 1)
    out_ref[...] = jnp.where(lane == 0, total,
                   jnp.where(lane == 1, cls_loss,
                   jnp.where(lane == 2, reg_loss, 0.0)))


@jax.jit
def adaptive_loss(cls_pred, cls_target, reg_pred, reg_target, reg_mask):
    """Shapes follow the PyTorch module: cls_pred (B,1), cls_target (B,),
       reg_pred (B,4), reg_target (B,4), reg_mask (B,)."""
    B = cls_target.shape[0]
    f32 = jnp.float32

    # Free bitcast reshapes only - no concatenate / transpose / HBM slab.
    x = cls_pred.reshape(B, 1).astype(f32)
    y = cls_target.reshape(B, 1).astype(f32)
    m = reg_mask.reshape(B, 1).astype(f32)
    rp = reg_pred.astype(f32)
    rt = reg_target.astype(f32)

    vmem = pl.BlockSpec(memory_space=pltpu.MemorySpace.VMEM)
    out = pl.pallas_call(
        adaptive_loss_kernel,
        out_shape=jax.ShapeDtypeStruct((1, 128), f32),
        in_specs=[vmem] * 5,
        out_specs=vmem,
    )(x, y, m, rp, rt)
    return out[0, 0], out[0, 1], out[0, 2]


def adaptive_loss_ref(cls_pred, cls_target, reg_pred, reg_target, reg_mask):
    """Pure-JAX reference replicating the PyTorch semantics."""
    x = cls_pred.reshape(-1).astype(jnp.float32)
    y = cls_target.astype(jnp.float32)
    n = x.shape[0]
    bce = jnp.maximum(x, 0.0) - x * y + jnp.log(1.0 + jnp.exp(-jnp.abs(x)))
    cls_loss = jnp.mean(bce)

    mask = reg_mask.astype(jnp.float32)
    valid = jnp.sum(mask)
    diff = (reg_pred - reg_target) * mask[:, None]
    absd = jnp.abs(diff)
    sl1 = jnp.where(absd < 1.0, 0.5 * diff * diff, absd - 0.5)
    reg_loss = jnp.where(valid > 0,
                         jnp.sum(sl1) / (reg_pred.shape[0] * jnp.maximum(valid, 1.0)),
                         0.0)

    cls_grad = (jax.nn.sigmoid(x) - y) / n
    cls_gnorm = jnp.linalg.norm(cls_grad)
    reg_grad = jnp.clip(diff, -1.0, 1.0) * mask[:, None] / (
        reg_pred.shape[0] * jnp.maximum(valid, 1.0))
    reg_gnorm = jnp.where(valid > 0, jnp.linalg.norm(reg_grad), 0.0)
    ratio = cls_gnorm / (reg_gnorm + 1e-8)
    reg_weight = jnp.where((reg_gnorm > 0) & (cls_gnorm > 0),
                           jnp.clip(ratio, 0.1, 10.0), 1.0)
    total = 1.0 * cls_loss + reg_weight * reg_loss
    return total, cls_loss, reg_loss


if __name__ == "__main__":
    # AdaptiveLoss has no learnable parameters; only inputs are needed.
    key = jax.random.PRNGKey(0)
    k1, k2, k3, k4 = jax.random.split(key, 4)
    B = 8
    cls_pred = jax.random.normal(k1, (B, 1), dtype=jnp.float32)
    cls_target = (jax.random.uniform(k2, (B,)) > 0.5).astype(jnp.float32)
    reg_pred = jax.random.normal(k3, (B, 4), dtype=jnp.float32)
    reg_target = jax.random.normal(k4, (B, 4), dtype=jnp.float32)
    reg_mask = jnp.array([1, 1, 0, 1, 1, 1, 0, 1], dtype=jnp.float32)

    total, cls_l, reg_l = adaptive_loss(cls_pred, cls_target, reg_pred,
                                        reg_target, reg_mask)
    jax.block_until_ready((total, cls_l, reg_l))

    t_ref, c_ref, r_ref = adaptive_loss_ref(cls_pred, cls_target, reg_pred,
                                            reg_target, reg_mask)
    assert np.allclose(np.array(total), np.array(t_ref), rtol=1e-4, atol=1e-5), (total, t_ref)
    assert np.allclose(np.array(cls_l), np.array(c_ref), rtol=1e-4, atol=1e-5), (cls_l, c_ref)
    assert np.allclose(np.array(reg_l), np.array(r_ref), rtol=1e-4, atol=1e-5), (reg_l, r_ref)

    print("KERNEL_OK")
</pallas_src>

<mosaic_0001>
module attributes {stable_mosaic.version = 11 : i64} {
  func.func @adaptive_loss_kernel(%arg0: memref<8x1xf32, #tpu.memory_space<vmem>>, %arg1: memref<8x1xf32, #tpu.memory_space<vmem>>, %arg2: memref<8x1xf32, #tpu.memory_space<vmem>>, %arg3: memref<8x4xf32, #tpu.memory_space<vmem>>, %arg4: memref<8x4xf32, #tpu.memory_space<vmem>>, %arg5: memref<1x128xf32, #tpu.memory_space<vmem>>) attributes {dimension_semantics = [], scalar_prefetch = 0 : i64, scratch_operands = 0 : i64, tpu.core_type = #tpu.core_type<tc>} {
    %c0 = arith.constant 0 : index
    %c0_0 = arith.constant 0 : index
    %0 = vector.load %arg0[%c0, %c0_0] : memref<8x1xf32, #tpu.memory_space<vmem>>, vector<8x1xf32>
    %c0_1 = arith.constant 0 : index
    %c0_2 = arith.constant 0 : index
    %1 = vector.load %arg1[%c0_1, %c0_2] : memref<8x1xf32, #tpu.memory_space<vmem>>, vector<8x1xf32>
    %c0_3 = arith.constant 0 : index
    %c0_4 = arith.constant 0 : index
    %2 = vector.load %arg2[%c0_3, %c0_4] : memref<8x1xf32, #tpu.memory_space<vmem>>, vector<8x1xf32>
    %c0_5 = arith.constant 0 : index
    %c0_6 = arith.constant 0 : index
    %3 = vector.load %arg3[%c0_5, %c0_6] : memref<8x4xf32, #tpu.memory_space<vmem>>, vector<8x4xf32>
    %c0_7 = arith.constant 0 : index
    %c0_8 = arith.constant 0 : index
    %4 = vector.load %arg4[%c0_7, %c0_8] : memref<8x4xf32, #tpu.memory_space<vmem>>, vector<8x4xf32>
    %5 = math.absf %0 : vector<8x1xf32>
    %cst = arith.constant 0.000000e+00 : f32
    %6 = vector.broadcast %cst : f32 to vector<8x1xf32>
    %7 = arith.subf %6, %5 : vector<8x1xf32>
    %8 = math.exp %7 : vector<8x1xf32>
    %cst_9 = arith.constant 0.000000e+00 : f32
    %9 = vector.broadcast %cst_9 : f32 to vector<8x1xf32>
    %10 = arith.maximumf %0, %9 : vector<8x1xf32>
    %11 = arith.mulf %0, %1 : vector<8x1xf32>
    %12 = arith.subf %10, %11 : vector<8x1xf32>
    %13 = math.log1p %8 : vector<8x1xf32>
    %14 = arith.addf %12, %13 : vector<8x1xf32>
    %cst_10 = arith.constant 1.000000e+00 : f32
    %15 = vector.broadcast %cst_10 : f32 to vector<8x1xf32>
    %16 = arith.addf %15, %8 : vector<8x1xf32>
    %cst_11 = arith.constant 1.000000e+00 : f32
    %17 = vector.broadcast %cst_11 : f32 to vector<8x1xf32>
    %18 = arith.divf %17, %16 : vector<8x1xf32>
    %cst_12 = arith.constant 0.000000e+00 : f32
    %19 = vector.broadcast %cst_12 : f32 to vector<8x1xf32>
    %20 = arith.cmpf oge, %0, %19 : vector<8x1xf32>
    %21 = arith.mulf %8, %18 : vector<8x1xf32>
    %22 = arith.select %20, %18, %21 : vector<8x1xi1>, vector<8x1xf32>
    %23 = arith.subf %22, %1 : vector<8x1xf32>
    %24 = arith.subf %3, %4 : vector<8x4xf32>
    %25 = vector.broadcast %2 : vector<8x1xf32> to vector<8x4xf32>
    %26 = arith.mulf %24, %25 : vector<8x4xf32>
    %27 = math.absf %26 : vector<8x4xf32>
    %cst_13 = arith.constant 1.000000e+00 : f32
    %28 = vector.broadcast %cst_13 : f32 to vector<8x4xf32>
    %29 = arith.cmpf olt, %27, %28 : vector<8x4xf32>
    %cst_14 = arith.constant 5.000000e-01 : f32
    %30 = vector.broadcast %cst_14 : f32 to vector<8x4xf32>
    %31 = arith.mulf %30, %26 : vector<8x4xf32>
    %32 = arith.mulf %31, %26 : vector<8x4xf32>
    %cst_15 = arith.constant 5.000000e-01 : f32
    %33 = vector.broadcast %cst_15 : f32 to vector<8x4xf32>
    %34 = arith.subf %27, %33 : vector<8x4xf32>
    %35 = arith.select %29, %32, %34 : vector<8x4xi1>, vector<8x4xf32>
    %cst_16 = arith.constant -1.000000e+00 : f32
    %cst_17 = arith.constant 1.000000e+00 : f32
    %36 = vector.broadcast %cst_16 : f32 to vector<8x4xf32>
    %37 = arith.maximumf %36, %26 : vector<8x4xf32>
    %38 = vector.broadcast %cst_17 : f32 to vector<8x4xf32>
    %39 = arith.minimumf %38, %37 : vector<8x4xf32>
    %cst_18 = arith.constant dense<0.000000e+00> : vector<1xf32>
    %40 = vector.multi_reduction <add>, %14, %cst_18 [0] : vector<8x1xf32> to vector<1xf32>
    %41 = vector.shape_cast %40 : vector<1xf32> to vector<1x1xf32>
    %cst_19 = arith.constant dense<0.000000e+00> : vector<1xf32>
    %42 = vector.multi_reduction <add>, %2, %cst_19 [0] : vector<8x1xf32> to vector<1xf32>
    %43 = vector.shape_cast %42 : vector<1xf32> to vector<1x1xf32>
    %44 = arith.mulf %23, %23 : vector<8x1xf32>
    %cst_20 = arith.constant dense<0.000000e+00> : vector<1xf32>
    %45 = vector.multi_reduction <add>, %44, %cst_20 [0] : vector<8x1xf32> to vector<1xf32>
    %46 = vector.shape_cast %45 : vector<1xf32> to vector<1x1xf32>
    %cst_21 = arith.constant dense<0.000000e+00> : vector<8xf32>
    %47 = vector.multi_reduction <add>, %35, %cst_21 [1] : vector<8x4xf32> to vector<8xf32>
    %48 = vector.shape_cast %47 : vector<8xf32> to vector<8x1xf32>
    %cst_22 = arith.constant dense<0.000000e+00> : vector<1xf32>
    %49 = vector.multi_reduction <add>, %48, %cst_22 [0] : vector<8x1xf32> to vector<1xf32>
    %50 = vector.shape_cast %49 : vector<1xf32> to vector<1x1xf32>
    %51 = arith.mulf %39, %39 : vector<8x4xf32>
    %cst_23 = arith.constant dense<0.000000e+00> : vector<8xf32>
    %52 = vector.multi_reduction <add>, %51, %cst_23 [1] : vector<8x4xf32> to vector<8xf32>
    %53 = vector.shape_cast %52 : vector<8xf32> to vector<8x1xf32>
    %cst_24 = arith.constant dense<0.000000e+00> : vector<1xf32>
    %54 = vector.multi_reduction <add>, %53, %cst_24 [0] : vector<8x1xf32> to vector<1xf32>
    %55 = vector.shape_cast %54 : vector<1xf32> to vector<1x1xf32>
    %cst_25 = arith.constant 1.250000e-01 : f32
    %56 = vector.broadcast %cst_25 : f32 to vector<1x1xf32>
    %57 = arith.mulf %41, %56 : vector<1x1xf32>
    %cst_26 = arith.constant 0.000000e+00 : f32
    %58 = vector.broadcast %cst_26 : f32 to vector<1x1xf32>
    %59 = arith.cmpf ogt, %43, %58 : vector<1x1xf32>
    %cst_27 = arith.constant 1.000000e+00 : f32
    %60 = vector.broadcast %cst_27 : f32 to vector<1x1xf32>
    %61 = arith.maximumf %43, %60 : vector<1x1xf32>
    %cst_28 = arith.constant 8.000000e+00 : f32
    %62 = vector.broadcast %cst_28 : f32 to vector<1x1xf32>
    %63 = arith.mulf %62, %61 : vector<1x1xf32>
    %64 = arith.divf %50, %63 : vector<1x1xf32>
    %cst_29 = arith.constant 0.000000e+00 : f32
    %65 = vector.broadcast %cst_29 : f32 to vector<1x1xf32>
    %66 = arith.select %59, %64, %65 : vector<1x1xi1>, vector<1x1xf32>
    %67 = math.sqrt %46 : vector<1x1xf32>
    %cst_30 = arith.constant 1.250000e-01 : f32
    %68 = vector.broadcast %cst_30 : f32 to vector<1x1xf32>
    %69 = arith.mulf %67, %68 : vector<1x1xf32>
    %70 = math.sqrt %55 : vector<1x1xf32>
    %71 = arith.divf %70, %63 : vector<1x1xf32>
    %cst_31 = arith.constant 0.000000e+00 : f32
    %72 = vector.broadcast %cst_31 : f32 to vector<1x1xf32>
    %73 = arith.select %59, %71, %72 : vector<1x1xi1>, vector<1x1xf32>
    %cst_32 = arith.constant 9.99999993E-9 : f32
    %74 = vector.broadcast %cst_32 : f32 to vector<1x1xf32>
    %75 = arith.addf %73, %74 : vector<1x1xf32>
    %76 = arith.divf %69, %75 : vector<1x1xf32>
    %cst_33 = arith.constant 0.000000e+00 : f32
    %77 = vector.broadcast %cst_33 : f32 to vector<1x1xf32>
    %78 = arith.cmpf ogt, %73, %77 : vector<1x1xf32>
    %cst_34 = arith.constant 0.000000e+00 : f32
    %79 = vector.broadcast %cst_34 : f32 to vector<1x1xf32>
    %80 = arith.cmpf ogt, %69, %79 : vector<1x1xf32>
    %81 = arith.andi %78, %80 : vector<1x1xi1>
    %cst_35 = arith.constant 1.000000e-01 : f32
    %cst_36 = arith.constant 1.000000e+01 : f32
    %82 = vector.broadcast %cst_35 : f32 to vector<1x1xf32>
    %83 = arith.maximumf %82, %76 : vector<1x1xf32>
    %84 = vector.broadcast %cst_36 : f32 to vector<1x1xf32>
    %85 = arith.minimumf %84, %83 : vector<1x1xf32>
    %cst_37 = arith.constant 1.000000e+00 : f32
    %86 = vector.broadcast %cst_37 : f32 to vector<1x1xf32>
    %87 = arith.select %81, %85, %86 : vector<1x1xi1>, vector<1x1xf32>
    %88 = arith.mulf %87, %66 : vector<1x1xf32>
    %89 = arith.addf %57, %88 : vector<1x1xf32>
    %90 = tpu.iota {dimensions = array<i32: 1>} : vector<1x128xi32>
    %c0_i32 = arith.constant 0 : i32
    %91 = vector.broadcast %c0_i32 : i32 to vector<1x128xi32>
    %92 = arith.cmpi eq, %90, %91 : vector<1x128xi32>
    %c1_i32 = arith.constant 1 : i32
    %93 = vector.broadcast %c1_i32 : i32 to vector<1x128xi32>
    %94 = arith.cmpi eq, %90, %93 : vector<1x128xi32>
    %c2_i32 = arith.constant 2 : i32
    %95 = vector.broadcast %c2_i32 : i32 to vector<1x128xi32>
    %96 = arith.cmpi eq, %90, %95 : vector<1x128xi32>
    %cst_38 = arith.constant 0.000000e+00 : f32
    %97 = vector.shape_cast %66 : vector<1x1xf32> to vector<1x1xf32>
    %98 = vector.broadcast %97 : vector<1x1xf32> to vector<1x128xf32>
    %99 = vector.broadcast %cst_38 : f32 to vector<1x128xf32>
    %100 = arith.select %96, %98, %99 : vector<1x128xi1>, vector<1x128xf32>
    %101 = vector.shape_cast %57 : vector<1x1xf32> to vector<1x1xf32>
    %102 = vector.broadcast %101 : vector<1x1xf32> to vector<1x128xf32>
    %103 = arith.select %94, %102, %100 : vector<1x128xi1>, vector<1x128xf32>
    %104 = vector.shape_cast %89 : vector<1x1xf32> to vector<1x1xf32>
    %105 = vector.broadcast %104 : vector<1x1xf32> to vector<1x128xf32>
    %106 = arith.select %92, %105, %103 : vector<1x128xi1>, vector<1x128xf32>
    %c0_39 = arith.constant 0 : index
    %c0_40 = arith.constant 0 : index
    %107 = vector.load %arg5[%c0_39, %c0_40] : memref<1x128xf32, #tpu.memory_space<vmem>>, vector<1x128xf32>
    tpu.vector_store %arg5[%c0_39, %c0_40], %106 {strides = array<i32>} : memref<1x128xf32, #tpu.memory_space<vmem>>, vector<1x128xf32>,
    return
  }
}

</mosaic_0001>

<bundles_post_ra>
// kernel: adaptive_loss.1
= control target key start
LH: loop header
LB: loop body
LE: loop exit
PB: predicated region body
PF: predicated region fallthrough
CT: control target
= control target key end

     0   :  { %v239_v0 = vmov 0   ;;  %vm100_vm0 = vcmask 31744   ;;  %vm77_vm2 = vcmask 7168   ;;  %s309_s2 = inlined_call_operand.vmem [shape: f32[8,1], index: 2, kind: input, shape index: {}]   ;;  %s310_s3 = inlined_call_operand.vmem [shape: f32[8,4], index: 3, kind: input, shape index: {}]   ;;  %s311_s4 = inlined_call_operand.vmem [shape: f32[8,4], index: 4, kind: input, shape index: {}]   ;;  %s312_s0 = inlined_call_operand.vmem [shape: f32[8,1], index: 0, kind: input, shape index: {}]   ;;  %s313_s1 = inlined_call_operand.vmem [shape: f32[8,1], index: 1, kind: input, shape index: {}]   ;;  %s314_s5 = inlined_call_operand.vmem [shape: f32[1,128], index: 5, kind: output, shape index: {}]  }
   0x1   :  { %222 = vset.pattern.permute.xlu0 %v239_v0  ;;  %v22_v1 = vld [vmem:[%s309_s2] sm:$0xff]  ;;  %223 = vset.pattern.permute.xlu1 %v239_v0 }
   0x2   :  { %65 = vperm.xlu0 %222, %v22_v1   ;;  %224 = vset.pattern.permute.xlu2 %v239_v0  ;;  %v23_v2 = vld [vmem:[%s310_s3] sm:$0xff]  ;;  %v85_v23 = vsel %vm77_vm2, %v22_v1, 0.0 }
   0x3   :  { %v24_v3 = vld [vmem:[%s311_s4] sm:$0xff]  ;;  %v86_v25 = vrot.slane %v85_v23, 4 }
   0x4   :  { %v62_v4 = vsub.f32 %v23_v2, %v24_v3  ;;  %v20_v16 = vld [vmem:[%s312_s0] sm:$0xff] }
   0x5   :  { %v25_v17 = vand.u32 2147483647, %v20_v16  ;;  %v87_v27 = vadd.f32 %v86_v25, %v85_v23  ;;  %vm58_vm7 = vcmp.ge.f32.partialorder %v20_v16, 0.0  ;;  %v21_v44 = vld [vmem:[%s313_s1] sm:$0xff]  ;;  %v29_v47 = vmax.f32 %v20_v16, 0.0 }
   0x6   :  { %v30_v48 = vmul.f32 %v21_v44, %v20_v16 }
   0x7   :  { %v26_v18 = vsub.f32 0.0, %v25_v17  ;;  %v88_v29 = vrot.slane %v87_v27, 2 }
   0x8   :  { %v31_v53 = vsub.f32 %v29_v47, %v30_v48 }
   0x9   :  { %v27_v19 = vmul.f32 1.442695, %v26_v18  ;;  %v89_v33 = vadd.f32 %v88_v29, %v87_v27 }
   0xb   :  { %225 = vpow2.f32 %v27_v19  ;;  %v90_v36 = vrot.slane %v89_v33, 1 }
   0xd   :  { %v283_v38 = vadd.f32 %v90_v36, %v89_v33 }
   0xf   :  { %v122_v41 = vmax.f32 %v283_v38, 1.0  ;;  %vm121_vm13 = vcmp.gt.f32.partialorder %v283_v38, 0.0 }
  0x11   :  { %v226_v20 = vpop.eup %225  ;;  %v123_v49 = vmul.f32 8.0, %v122_v41 }
  0x12   :  { %v32_v21 = vadd.f32 1.0, %v226_v20  ;;  %v35_v39 = vmul.f32 -0.5, %v226_v20  ;;  %v38_v45 = vand.u32 2147483647, %v226_v20 }
  0x13   :  { %vm129_vm9 = vweird.f32 %v123_v49 }
  0x14   :  { %227 = vrcp.f32 %v32_v21  ;;  %vm48_vm3 = vweird.f32 %v32_v21  ;;  %v54_v30 = vand.u32 2147483648, %v32_v21  ;;  %v52_v32 = vand.u32 2147483647, %v32_v21 }
  0x15   :  { %229 = vlog2.f32 %v32_v21  ;;  %v36_v42 = vadd.f32 1.0, %v35_v39  ;;  %vm39_vm8 = vcmp.lt.f32.partialorder %v38_v45, 0.0004427343 }
  0x16   :  { %v55_v34 = vor.u32 1.1754944e-38, %v54_v30  ;;  %vm53_vm6 = vcmp.eq.f32.partialorder %v52_v32, 8.507059e+37  ;;  %231 = vrcp.f32 %v123_v49 }
  0x17   :  { %v37_v51 = vmul.f32 %v226_v20, %v36_v42 }
  0x1a   :  { %v228_v22 = vpop.eup %227 }
  0x1b   :  { %v44_v24 = vmul.f32 %v228_v22, %v32_v21  ;;  %vm49_vm4 = vweird.f32 %v228_v22  ;;  %v230_v43 = vpop.eup %229 }
  0x1c   :  { %vm50_vm5 = vmor %vm48_vm3, %vm49_vm4  ;;  %v34_v50 = vmul.f32 0.6931472, %v230_v43  ;;  %v232_v58 = vpop.eup %231 }
  0x1d   :  { %v45_v26 = vsub.f32 1.0, %v44_v24  ;;  %v125_v61 = vmul.f32 %v232_v58, %v123_v49  ;;  %vm130_vm10 = vweird.f32 %v232_v58 }
  0x1e   :  { %v40_v54 = vsel %vm39_vm8, %v37_v51, %v34_v50  ;;  %vm291_vm11 = vmor %vm129_vm9, %vm130_vm10 }
  0x1f   :  { %v46_v28 = vmul.f32 %v228_v22, %v45_v26  ;;  %v41_v56 = vadd.f32 %v40_v54, %v31_v53  ;;  %v126_v0 = vsub.f32 1.0, %v125_v61 }
  0x21   :  { %v47_v31 = vadd.f32 %v228_v22, %v46_v28  ;;  %v78_v59 = vsel %vm77_vm2, %v41_v56, 0.0 }
  0x22   :  { %v79_v62 = vrot.slane %v78_v59, 4 }
  0x23   :  { %v51_v35 = vsel %vm50_vm5, %v228_v22, %v47_v31 }
  0x24   :  { %v56_v37 = vsel %vm53_vm6, %v55_v34, %v51_v35  ;;  %v80_v1 = vadd.f32 %v79_v62, %v78_v59 }
  0x25   :  { %v59_v40 = vmul.f32 %v226_v20, %v56_v37 }
  0x27   :  { %v60_v46 = vsel %vm58_vm7, %v56_v37, %v59_v40 }
  0x28   :  { %v61_v52 = vsub.f32 %v60_v46, %v21_v44 }
  0x2a   :  { %v92_v55 = vmul.f32 %v61_v52, %v61_v52 }
  0x2c   :  { %v93_v57 = vsel %vm77_vm2, %v92_v55, 0.0 }
  0x2d   :  { %v94_v60 = vrot.slane %v93_v57, 4 }
  0x2f   :  { %v95_v63 = vadd.f32 %v94_v60, %v93_v57 }
  0x31   :  { %v96_v2 = vrot.slane %v95_v63, 2 }
  0x74   :  { %v66_v5 = vpop.permute.xlu0 %65 }
  0x75   :  { %v68_v6 = vmul.f32 %v66_v5, %v62_v4  ;;  %v127_v4 = vmul.f32 %v232_v58, %v126_v0  ;;  %v81_v5 = vrot.slane %v80_v1, 2 }
  0x77   :  { %v220_v7 = vclamps-f32 %v68_v6, 1.0  ;;  %v69_v8 = vand.u32 2147483647, %v68_v6  ;;  %v71_v9 = vmul.f32 0.5, %v68_v6 }
  0x79   :  { %v110_v10 = vmul.f32 %v220_v7, %v220_v7  ;;  %vm70_vm1 = vcmp.lt.f32.partialorder %v69_v8, 1.0  ;;  %v72_v11 = vmul.f32 %v71_v9, %v68_v6  ;;  %v219_v12 = vadd.f32 -0.5, %v69_v8 }
  0x7a   :  { %v82_v9 = vadd.f32 %v81_v5, %v80_v1 }
  0x7b   :  { %v111_v13 = vsel %vm100_vm0, %v110_v10, 0.0  ;;  %v74_v14 = vsel %vm70_vm1, %v72_v11, %v219_v12  ;;  %v97_v10 = vadd.f32 %v96_v2, %v95_v63  ;;  %v135_v12 = vand.u32 2147483648, %v123_v49 }
  0x7c   :  { %112 = vadd.xlane.f32.xlu0 %v111_v13  ;;  %v101_v15 = vsel %vm100_vm0, %v74_v14, 0.0  ;;  %v128_v14 = vadd.f32 %v232_v58, %v127_v4  ;;  %v83_v16 = vrot.slane %v82_v9, 1 }
  0x7d   :  { %102 = vadd.xlane.f32.xlu1 %v101_v15  ;;  %v133_v15 = vand.u32 2147483647, %v123_v49  ;;  %v98_v21 = vrot.slane %v97_v10, 1  ;;  %v136_v23 = vor.u32 1.1754944e-38, %v135_v12 }
  0x7e   :  { %v84_v20 = vadd.f32 %v83_v16, %v82_v9  ;;  %v132_v25 = vsel %vm291_vm11, %v232_v58, %v128_v14 }
  0x7f   :  { %vm134_vm12 = vcmp.eq.f32.partialorder %v133_v15, 8.507059e+37  ;;  %v99_v29 = vadd.f32 %v98_v21, %v97_v10 }
  0x80   :  { %v297_v26 = vmul.f32 0.125, %v84_v20  ;;  %v137_v31 = vsel %vm134_vm12, %v136_v23, %v132_v25 }
  0x81   :  { %vm147_vm0 = vcmp.eq.f32.partialorder %v99_v29, inf  ;;  %v150_v58 = vand.u32 2147483648, %v99_v29  ;;  %vm149_vm1 = vcmp.eq.f32.partialorder %v99_v29, 0.0 }
  0x82   :  { %204 = vperm.xlu2 %224, %v297_v26  }
  0xef   :  { %v113_v3 = vpop.xlane.xlu0 %112 }
  0xf0   :  { %v114_v6 = vrot.slane %v113_v3, 4  ;;  %v103_v7 = vpop.xlane.xlu1 %102 }
  0xf1   :  { %v104_v8 = vrot.slane %v103_v7, 4 }
  0xf2   :  { %v115_v11 = vadd.f32 %v114_v6, %v113_v3 }
  0xf3   :  { %v105_v13 = vadd.f32 %v104_v8, %v103_v7 }
  0xf4   :  { %v116_v17 = vrot.slane %v115_v11, 2 }
  0xf5   :  { %v106_v19 = vrot.slane %v105_v13, 2 }
  0xf6   :  { %v117_v22 = vadd.f32 %v116_v17, %v115_v11  ;;  %v191_v11 = vlaneseq }
  0xf7   :  { %v107_v24 = vadd.f32 %v106_v19, %v105_v13  ;;  %v205_v13 = vpop.permute.xlu2 %204 }
  0xf8   :  { %v118_v27 = vrot.slane %v117_v22, 1  ;;  %v192_v12 = vand.u32 127, %v191_v11 }
  0xf9   :  { %v108_v28 = vrot.slane %v107_v24, 1 }
  0xfa   :  { %v119_v30 = vadd.f32 %v118_v27, %v117_v22  ;;  %vm195_vm9 = vcmp.eq.s32.totalorder %v192_v12, 2  ;;  %vm194_vm10 = vcmp.eq.s32.totalorder %v192_v12, 1  ;;  %vm193_vm11 = vcmp.eq.s32.totalorder %v192_v12, 0 }
  0xfb   :  { %v109_v32 = vadd.f32 %v108_v28, %v107_v24 }
  0xfc   :  { %233 = vrsqrt.f32 %v119_v30  ;;  %vm160_vm14 = vcmp.eq.f32.partialorder %v119_v30, inf  ;;  %v163_v46 = vand.u32 2147483648, %v119_v30  ;;  %vm162_vm15 = vcmp.eq.f32.partialorder %v119_v30, 0.0 }
  0xfd   :  { %v138_v33 = vmul.f32 %v137_v31, %v109_v32  ;;  %235 = vrsqrt.f32 %v99_v29 }
  0xff   :  { %v139_v34 = vsel %vm121_vm13, %v138_v33, 0.0 }
 0x100   :  { %198 = vperm.xlu1 %223, %v139_v34  }
 0x102   :  { %v234_v35 = vpop.eup %233 }
 0x103   :  { %v154_v36 = vmul.f32 %v234_v35, %v119_v30  ;;  %v236_v37 = vpop.eup %235 }
 0x104   :  { %v141_v41 = vmul.f32 %v236_v37, %v99_v29 }
 0x105   :  { %v155_v39 = vmul.f32 %v234_v35, %v154_v36 }
 0x106   :  { %v142_v44 = vmul.f32 %v236_v37, %v141_v41 }
 0x107   :  { %v156_v40 = vmul.f32 0.5, %v155_v39 }
 0x108   :  { %v143_v48 = vmul.f32 0.5, %v142_v44 }
 0x109   :  { %v157_v42 = vsub.f32 1.5, %v156_v40 }
 0x10a   :  { %v144_v52 = vsub.f32 1.5, %v143_v48 }
 0x10b   :  { %v158_v43 = vmul.f32 %v234_v35, %v157_v42 }
 0x10c   :  { %v145_v54 = vmul.f32 %v236_v37, %v144_v52 }
 0x10d   :  { %v159_v45 = vmul.f32 %v158_v43, %v119_v30 }
 0x10e   :  { %v146_v55 = vmul.f32 %v145_v54, %v99_v29 }
 0x10f   :  { %v161_v47 = vsel %vm160_vm14, %v119_v30, %v159_v45 }
 0x110   :  { %v164_v49 = vsel %vm162_vm15, %v163_v46, %v161_v47  ;;  %v148_v60 = vsel %vm147_vm0, %v99_v29, %v146_v55 }
 0x111   :  { %v165_v50 = vmul.f32 %v164_v49, %v137_v31  ;;  %v151_v0 = vsel %vm149_vm1, %v150_v58, %v148_v60 }
 0x112   :  { %v152_v3 = vmul.f32 0.125, %v151_v0 }
 0x113   :  { %v166_v51 = vsel %vm121_vm13, %v165_v50, 0.0 }
 0x114   :  { %v167_v53 = vadd.f32 1e-08, %v166_v51  ;;  %vm183_vm6 = vcmp.gt.f32.partialorder %v166_v51, 0.0  ;;  %vm184_vm7 = vcmp.gt.f32.partialorder %v152_v3, 0.0 }
 0x115   :  { %vm185_vm8 = vmand %vm183_vm6, %vm184_vm7 }
 0x116   :  { %237 = vrcp.f32 %v167_v53  ;;  %v179_v61 = vand.u32 2147483648, %v167_v53  ;;  %v177_v63 = vand.u32 2147483647, %v167_v53  ;;  %vm173_vm3 = vweird.f32 %v167_v53 }
 0x118   :  { %v180_v38 = vor.u32 1.1754944e-38, %v179_v61  ;;  %vm178_vm5 = vcmp.eq.f32.partialorder %v177_v63, 8.507059e+37 }
 0x11c   :  { %v238_v56 = vpop.eup %237 }
 0x11d   :  { %v169_v57 = vmul.f32 %v238_v56, %v167_v53  ;;  %vm174_vm2 = vweird.f32 %v238_v56 }
 0x11e   :  { %vm175_vm4 = vmor %vm173_vm3, %vm174_vm2 }
 0x11f   :  { %v170_v59 = vsub.f32 1.0, %v169_v57 }
 0x121   :  { %v171_v62 = vmul.f32 %v238_v56, %v170_v59 }
 0x123   :  { %v172_v1 = vadd.f32 %v238_v56, %v171_v62 }
 0x125   :  { %v176_v2 = vsel %vm175_vm4, %v238_v56, %v172_v1 }
 0x126   :  { %v181_v4 = vsel %vm178_vm5, %v180_v38, %v176_v2 }
 0x127   :  { %v182_v5 = vmul.f32 %v181_v4, %v152_v3 }
 0x129   :  { %v186_v6 = vmax.f32 %v182_v5, 0.1 }
 0x12b   :  { %v187_v7 = vmin.f32 %v186_v6, 10.0 }
 0x12d   :  { %v188_v8 = vsel %vm185_vm8, %v187_v7, 1.0 }
 0x12e   :  { %v189_v9 = vmul.f32 %v188_v8, %v139_v34 }
 0x130   :  { %v190_v10 = vadd.f32 %v189_v9, %v297_v26 }
 0x132   :  { %210 = vperm.xlu2 %224, %v190_v10  }
 0x172   :  { %v199_v14 = vpop.permute.xlu1 %198 }
 0x173   :  { %v201_v15 = vsel %vm195_vm9, %v199_v14, 0.0 }
 0x174   :  { %v207_v16 = vsel %vm194_vm10, %v205_v13, %v201_v15 }
 0x18c   :  { %v211_v17 = vpop.permute.xlu2 %210 }
 0x18d   :  { %v213_v18 = vsel %vm193_vm11, %v211_v17, %v207_v16 }
 0x18e   :  { %214 = vst [vmem:[%s314_s5] sm:$0x1] %v213_v18 }

</bundles_post_ra>
